<compile_context>
chip_gen: v5e
topology: v5e:2x2
jax: 0.10.0
libtpu: 0.0.40
codegen_flags: <defaults>
</compile_context>

<pallas_src>
import functools

import jax
import jax.numpy as jnp
from jax.experimental import pallas as pl
from jax.experimental.pallas import tpu as pltpu


def _round_up(x, m):
    return (x + m - 1) // m * m


# 48 MiB: safely under v7x's 64 MiB physical VMEM, extra headroom on v5e/v6e.
_VMEM_LIMIT = 48 * 1024 * 1024


# ----------------------------------------------------------------------------
# Kernel 1: tiled matmul, fused BN scale/shift + optional residual + ReLU.
#   out = act((A @ B) * scale + shift [+ residual]),  A/B/res bf16, acc f32.
# ----------------------------------------------------------------------------
def _mm_bn_act_kernel(*refs, relu, has_res):
    if has_res:
        a_ref, b_ref, s_ref, c_ref, r_ref, o_ref, acc_ref = refs
    else:
        a_ref, b_ref, s_ref, c_ref, o_ref, acc_ref = refs
        r_ref = None

    @pl.when(pl.program_id(2) == 0)
    def _():
        acc_ref[...] = jnp.zeros_like(acc_ref)

    acc_ref[...] += jnp.dot(a_ref[...], b_ref[...],
                            preferred_element_type=jnp.float32)

    @pl.when(pl.program_id(2) == pl.num_programs(2) - 1)
    def _():
        r = acc_ref[...] * s_ref[...] + c_ref[...]
        if has_res:
            r = r + r_ref[...].astype(jnp.float32)
        if relu:
            r = jnp.maximum(r, 0.0)
        o_ref[...] = r.astype(o_ref.dtype)


def _pick_tiles(M, N, K):
    """Divisor-aware tiles; full-K single step whenever K<=2048 (no K pad,
    covers the stem's K=147 and every 1x1 conv in ResNet-50)."""
    if M >= 1024 and M % 512 == 0:
        tm = 512
    elif M >= 512 and M % 256 == 0:
        tm = 256
    elif M >= 128:
        tm = 128
    else:
        tm = _round_up(M, 8)
    Mp = _round_up(M, tm)
    if N >= 256 and N % 256 == 0:
        tn, Np = 256, N
    elif N >= 128:
        tn, Np = 128, _round_up(N, 128)
    else:
        tn, Np = N, N                       # full lane dim, no pad
    if K <= 2048:
        tk, Kp = K, K                       # single full-K step, no pad
    else:
        Kp = _round_up(K, 128)
        tk = next(t for t in (2048, 1024, 512, 256, 128) if Kp % t == 0)
    return tm, tn, tk, Mp, Np, Kp


def _pad2(x, rows, cols):
    r, c = x.shape
    if r == rows and c == cols:
        return x
    return jnp.pad(x, ((0, rows - r), (0, cols - c)))


def matmul_bn_act(a, b, scale, shift, relu, residual=None):
    """act((a @ b) * scale + shift [+ residual]); per-column scale/shift."""
    M, K = a.shape
    K2, N = b.shape
    assert K == K2
    tm, tn, tk, Mp, Np, Kp = _pick_tiles(M, N, K)

    a_p = _pad2(a.astype(jnp.bfloat16), Mp, Kp)
    b_p = _pad2(b.astype(jnp.bfloat16), Kp, Np)
    s_p = _pad2(scale.reshape(1, N).astype(jnp.float32), 1, Np)
    c_p = _pad2(shift.reshape(1, N).astype(jnp.float32), 1, Np)

    has_res = residual is not None
    in_specs = [
        pl.BlockSpec((tm, tk), lambda i, j, k: (i, k)),
        pl.BlockSpec((tk, tn), lambda i, j, k: (k, j)),
        pl.BlockSpec((1, tn), lambda i, j, k: (0, j)),
        pl.BlockSpec((1, tn), lambda i, j, k: (0, j)),
    ]
    operands = [a_p, b_p, s_p, c_p]
    if has_res:
        in_specs.append(pl.BlockSpec((tm, tn), lambda i, j, k: (i, j)))
        operands.append(_pad2(residual.astype(jnp.bfloat16), Mp, Np))

    bytes_accessed = int((Mp * Kp + Kp * Np + Mp * Np) * 2 + 2 * Np * 4
                         + (Mp * Np * 2 if has_res else 0))
    ce = pl.CostEstimate(flops=int(2 * Mp * Np * Kp), transcendentals=0,
                         bytes_accessed=bytes_accessed)

    out = pl.pallas_call(
        functools.partial(_mm_bn_act_kernel, relu=relu, has_res=has_res),
        out_shape=jax.ShapeDtypeStruct((Mp, Np), jnp.bfloat16),
        grid_spec=pltpu.PrefetchScalarGridSpec(
            num_scalar_prefetch=0,
            grid=(Mp // tm, Np // tn, Kp // tk),
            in_specs=in_specs,
            out_specs=pl.BlockSpec((tm, tn), lambda i, j, k: (i, j)),
            scratch_shapes=[pltpu.VMEM((tm, tn), jnp.float32)],
        ),
        compiler_params=pltpu.CompilerParams(
            dimension_semantics=("parallel", "parallel", "arbitrary"),
            vmem_limit_bytes=_VMEM_LIMIT),
        cost_estimate=ce,
    )(*operands)
    if Mp != M or Np != N:
        out = out[:M, :N]
    return out


# ----------------------------------------------------------------------------
# Kernel 2: direct 3x3 conv (stride 1 or 2) with fused BN + ReLU.
# The (padded / quadrant-split) image is flattened over (rows, width), so each
# of the 9 taps is a contiguous offset slice of a VMEM-resident buffer. Output
# image rows are tiled over a grid axis; only the Wo valid columns per row are
# stored (no post-kernel slice). Weights stay resident (constant index_map).
# ----------------------------------------------------------------------------
def _conv3x3_kernel(x_ref, w_ref, s_ref, c_ref, o_ref, tmp_ref, *,
                    taps, wq, ro, wo, cin, relu):
    m = ro * wq
    cout = o_ref.shape[-1]
    base = pl.program_id(1) * m
    acc = jnp.zeros((m, cout), jnp.float32)
    for t, (q, delta) in enumerate(taps):
        a = x_ref[0, q, pl.ds(base + delta, m), :]
        wt = w_ref[pl.ds(t * cin, cin), :]
        acc = acc + jnp.dot(a, wt, preferred_element_type=jnp.float32)
    r = acc * s_ref[...] + c_ref[...]
    if relu:
        r = jnp.maximum(r, 0.0)
    tmp_ref[...] = r.astype(o_ref.dtype)
    # Store only the wo valid columns of each image row (drops the per-row
    # garbage positions that exist because of the flattened-row formulation).
    for rr in range(ro):
        o_ref[0, rr] = tmp_ref[pl.ds(rr * wq, wo), :]


def _pick_row_tile(Ho, Wq, Cout):
    """Largest divisor of Ho with a flattened tile <= 512 rows and an f32
    accumulator <= 512 KiB."""
    best = 1
    for d in range(1, Ho + 1):
        if Ho % d == 0:
            flat = d * Wq
            if flat <= 512 and flat * Cout * 4 <= 512 * 1024:
                best = d
    return best


def _conv3x3_call(xq, wf, scale, shift, taps, *, Ho, Wo, Wq, relu):
    N, NB, Lq, Cin = xq.shape
    Cout = wf.shape[-1]
    Ro = _pick_row_tile(Ho, Wq, Cout)
    M = Ro * Wq
    ce = pl.CostEstimate(
        flops=int(2 * N * Ho * Wq * 9 * Cin * Cout),
        transcendentals=0,
        bytes_accessed=int(xq.size * 2 + wf.size * 2
                           + N * Ho * Wo * Cout * 2 + 2 * Cout * 4))
    return pl.pallas_call(
        functools.partial(_conv3x3_kernel, taps=tuple(taps), wq=Wq, ro=Ro,
                          wo=Wo, cin=Cin, relu=relu),
        out_shape=jax.ShapeDtypeStruct((N, Ho, Wo, Cout), jnp.bfloat16),
        grid_spec=pltpu.PrefetchScalarGridSpec(
            num_scalar_prefetch=0,
            grid=(N, Ho // Ro),
            in_specs=[
                pl.BlockSpec((1, NB, Lq, Cin), lambda n, r: (n, 0, 0, 0)),
                pl.BlockSpec((9 * Cin, Cout), lambda n, r: (0, 0)),
                pl.BlockSpec((1, Cout), lambda n, r: (0, 0)),
                pl.BlockSpec((1, Cout), lambda n, r: (0, 0)),
            ],
            out_specs=pl.BlockSpec((1, Ro, Wo, Cout),
                                   lambda n, r: (n, r, 0, 0)),
            scratch_shapes=[pltpu.VMEM((M, Cout), jnp.bfloat16)],
        ),
        compiler_params=pltpu.CompilerParams(
            dimension_semantics=("parallel", "parallel"),
            vmem_limit_bytes=_VMEM_LIMIT),
        cost_estimate=ce,
    )(xq, wf.astype(jnp.bfloat16),
      scale.reshape(1, Cout).astype(jnp.float32),
      shift.reshape(1, Cout).astype(jnp.float32))


def conv3x3_s1(x, p, relu=True):
    """3x3, stride 1, pad 1 conv + folded BN (+ ReLU), NHWC, bf16 in/out."""
    N, H, W, Cin = x.shape
    w = p["w"]
    Cout = w.shape[-1]
    Wq = W + 2
    # pad (top 1, bottom 3, left 1, right 1): the bottom pad of 3 keeps every
    # flattened tap read (including the 2 garbage cols per row) in bounds.
    xp = jnp.pad(x.astype(jnp.bfloat16), ((0, 0), (1, 3), (1, 1), (0, 0)))
    Lq = (H + 4) * Wq
    xq = xp.reshape(N, 1, Lq, Cin)
    taps = [(0, dy * Wq + dx) for dy in range(3) for dx in range(3)]
    wf = w.reshape(9 * Cin, Cout)
    return _conv3x3_call(xq, wf, p["scale"], p["shift"], taps,
                         Ho=H, Wo=W, Wq=Wq, relu=relu)


def conv3x3_s2(x, p, relu=True):
    """3x3, stride 2, pad 1 conv + folded BN (+ ReLU) via a 4-quadrant
    space-to-depth split (one activation HBM pass, no 9x im2col)."""
    N, H, W, Cin = x.shape
    w = p["w"]
    Cout = w.shape[-1]
    Ho = (H - 1) // 2 + 1
    Wo = (W - 1) // 2 + 1
    Hp = max(H + 2, 2 * Ho + 4)
    Hp += Hp % 2                       # even -> equal-sized row quadrants
    Wp = W + 2
    Wp += Wp % 2                       # even -> equal-sized col quadrants
    xp = jnp.pad(x.astype(jnp.bfloat16),
                 ((0, 0), (1, Hp - H - 1), (1, Wp - W - 1), (0, 0)))
    Hq, Wq = Hp // 2, Wp // 2
    quads = jnp.stack([xp[:, a::2, b::2, :] for a in range(2)
                       for b in range(2)], axis=1)        # (N, 4, Hq, Wq, Cin)
    xq = quads.reshape(N, 4, Hq * Wq, Cin)
    taps, wparts = [], []
    for dy in range(3):
        for dx in range(3):
            taps.append(((dy % 2) * 2 + (dx % 2), (dy // 2) * Wq + dx // 2))
            wparts.append(w[dy, dx])                      # (Cin, Cout)
    wf = jnp.concatenate(wparts, axis=0)                  # (9*Cin, Cout)
    return _conv3x3_call(xq, wf, p["scale"], p["shift"], taps,
                         Ho=Ho, Wo=Wo, Wq=Wq, relu=relu)


# ----------------------------------------------------------------------------
# Conv wrappers / pooling glue
# ----------------------------------------------------------------------------
def conv1x1(x, p, stride, relu, residual=None):
    """1x1 conv + BN (+ ReLU) (+ fused residual add before ReLU)."""
    if stride > 1:
        x = x[:, ::stride, ::stride, :]
    N, H, W, Cin = x.shape
    Cout = p["w"].shape[-1]
    res = residual.reshape(N * H * W, Cout) if residual is not None else None
    out = matmul_bn_act(x.reshape(N * H * W, Cin),
                        p["w"].reshape(Cin, Cout),
                        p["scale"], p["shift"], relu, residual=res)
    return out.reshape(N, H, W, Cout)


def conv_im2col(x, p, stride, pad, relu):
    """General conv via bf16 im2col + Pallas matmul (7x7 stem only: K=147
    keeps the MXU K deep enough; full-K single step, no zero-padding)."""
    w = p["w"]
    N, H, W, Cin = x.shape
    KH, KW, _, Cout = w.shape
    Ho = (H + 2 * pad - KH) // stride + 1
    Wo = (W + 2 * pad - KW) // stride + 1
    x_p = jnp.pad(x.astype(jnp.bfloat16),
                  ((0, 0), (pad, pad), (pad, pad), (0, 0)))
    cols = []
    for dy in range(KH):
        for dx in range(KW):
            cols.append(x_p[:, dy:dy + stride * (Ho - 1) + 1:stride,
                            dx:dx + stride * (Wo - 1) + 1:stride, :])
    patches = jnp.concatenate(cols, axis=-1)
    A = patches.reshape(N * Ho * Wo, KH * KW * Cin)
    B = w.reshape(KH * KW * Cin, Cout)
    out = matmul_bn_act(A, B, p["scale"], p["shift"], relu)
    return out.reshape(N, Ho, Wo, Cout)


def maxpool_3x3_s2(x):
    """MaxPool2d(kernel=3, stride=2, padding=1), NHWC (tiny JAX glue).
    NOTE: -inf padding is valid for bf16/f32 activations only."""
    N, H, W, C = x.shape
    Ho = (H + 2 - 3) // 2 + 1
    Wo = (W + 2 - 3) // 2 + 1
    x_p = jnp.pad(x, ((0, 0), (1, 1), (1, 1), (0, 0)),
                  constant_values=-jnp.inf)
    out = None
    for dy in range(3):
        for dx in range(3):
            v = x_p[:, dy:dy + 2 * (Ho - 1) + 1:2,
                    dx:dx + 2 * (Wo - 1) + 1:2, :]
            out = v if out is None else jnp.maximum(out, v)
    return out


def adaptive_avg_pool(x, out_h, out_w):
    """nn.AdaptiveAvgPool2d semantics, NHWC -> [N, out_h, out_w, C] (f32)."""
    N, H, W, C = x.shape
    xf = x.astype(jnp.float32)
    rows = []
    for i in range(out_h):
        hs = (i * H) // out_h
        he = ((i + 1) * H + out_h - 1) // out_h
        cols = []
        for j in range(out_w):
            ws = (j * W) // out_w
            we = ((j + 1) * W + out_w - 1) // out_w
            cols.append(jnp.mean(xf[:, hs:he, ws:we, :], axis=(1, 2)))
        rows.append(jnp.stack(cols, axis=1))
    return jnp.stack(rows, axis=1)


# ----------------------------------------------------------------------------
# Deterministic parameter init (synthetic ResNet-50, BN folded, bf16 weights)
# ----------------------------------------------------------------------------
class _KeyGen:
    def __init__(self, seed):
        self._key = jax.random.PRNGKey(seed)

    def __call__(self):
        self._key, k = jax.random.split(self._key)
        return k


def _conv_bn_params(kg, kh, kw, cin, cout):
    fan_in = kh * kw * cin
    w = (jax.random.normal(kg(), (kh, kw, cin, cout), jnp.float32)
         * jnp.sqrt(2.0 / fan_in)).astype(jnp.bfloat16)
    gamma = jax.random.uniform(kg(), (cout,), jnp.float32, 0.5, 1.0)
    beta = 0.02 * jax.random.normal(kg(), (cout,), jnp.float32)
    mean = 0.02 * jax.random.normal(kg(), (cout,), jnp.float32)
    var = jax.random.uniform(kg(), (cout,), jnp.float32, 0.8, 1.2)
    scale = gamma / jnp.sqrt(var + 1e-5)
    shift = beta - mean * scale
    return {"w": w, "scale": scale, "shift": shift}


_LAYER_CFG = [(64, 3, 1), (128, 4, 2), (256, 6, 2), (512, 3, 2)]  # resnet50


def init_image_encoder_params(seed):
    kg = _KeyGen(seed)
    params = {"stem": _conv_bn_params(kg, 7, 7, 3, 64)}
    inplanes = 64
    layers = []
    for planes, nblocks, _stride in _LAYER_CFG:
        blocks = []
        for b in range(nblocks):
            blk = {
                "conv1": _conv_bn_params(kg, 1, 1, inplanes, planes),
                "conv2": _conv_bn_params(kg, 3, 3, planes, planes),
                "conv3": _conv_bn_params(kg, 1, 1, planes, planes * 4),
            }
            if b == 0:
                blk["down"] = _conv_bn_params(kg, 1, 1, inplanes, planes * 4)
            blocks.append(blk)
            inplanes = planes * 4
        layers.append(blocks)
    params["layers"] = layers
    assert inplanes == 2048
    return params


# ----------------------------------------------------------------------------
# Forward pass (ImageEncoder.forward, pool_type == 'avg')
# ----------------------------------------------------------------------------
def image_encoder_forward(params, x_nchw, num_image_embeds):
    # PyTorch gives NCHW; transpose once to NHWC + cast to bf16.
    x = jnp.transpose(x_nchw, (0, 2, 3, 1)).astype(jnp.bfloat16)
    x = conv_im2col(x, params["stem"], stride=2, pad=3, relu=True)
    x = maxpool_3x3_s2(x)
    for li, (_planes, nblocks, stride) in enumerate(_LAYER_CFG):
        for b in range(nblocks):
            blk = params["layers"][li][b]
            s = stride if b == 0 else 1
            out = conv1x1(x, blk["conv1"], 1, relu=True)
            if s == 1:
                out = conv3x3_s1(out, blk["conv2"], relu=True)
            else:
                out = conv3x3_s2(out, blk["conv2"], relu=True)
            if "down" in blk:
                identity = conv1x1(x, blk["down"], s, relu=False)
            else:
                identity = x
            # conv3 + BN + residual add + ReLU fused in one kernel epilogue
            x = conv1x1(out, blk["conv3"], 1, relu=True, residual=identity)
    # AdaptiveAvgPool2d((E,1)) -> flatten(2) -> transpose(1,2) == [N, E, C]
    pooled = adaptive_avg_pool(x, num_image_embeds, 1)        # [N, E, 1, C]
    return pooled.reshape(pooled.shape[0], num_image_embeds, -1)


# ----------------------------------------------------------------------------
if __name__ == "__main__":
    NUM_IMAGE_EMBEDS = 3      # args.num_image_embeds
    # args.img_embed_pool_type == 'avg'

    key = jax.random.PRNGKey(0)
    x = jax.random.normal(key, (2, 3, 64, 64), jnp.float32)   # NCHW like torch

    deq = lambda t: t.astype(jnp.bfloat16).astype(jnp.float32)

    # --- self-test 1: matmul + BN + ReLU kernel (plain and residual-fused) ---
    k1, k2, k3, k4, k5 = jax.random.split(key, 5)
    a = jax.random.normal(k1, (37, 75), jnp.float32)
    b = jax.random.normal(k2, (75, 50), jnp.float32)
    s = jax.random.uniform(k3, (50,), jnp.float32, 0.5, 1.5)
    c = jax.random.normal(k4, (50,), jnp.float32)
    r = jax.random.normal(k5, (37, 50), jnp.float32)
    base = jnp.dot(deq(a), deq(b), precision="highest") * s[None] + c[None]
    got = matmul_bn_act(a, b, s, c, relu=True).astype(jnp.float32)
    assert jnp.allclose(got, jnp.maximum(base, 0.0), rtol=2e-2, atol=2e-2), \
        "matmul kernel mismatch"
    got2 = matmul_bn_act(a, b, s, c, relu=True, residual=r).astype(jnp.float32)
    assert jnp.allclose(got2, jnp.maximum(base + deq(r), 0.0),
                        rtol=2e-2, atol=2e-2), "fused residual mismatch"

    # --- self-test 2: direct 3x3 conv kernel (stride 1 and 2) vs XLA conv ---
    kx, kw_, ks, kc = jax.random.split(jax.random.PRNGKey(1), 4)
    xt = jax.random.normal(kx, (2, 8, 8, 32), jnp.float32)
    wt = jax.random.normal(kw_, (3, 3, 32, 64), jnp.float32) * 0.1
    st = jax.random.uniform(ks, (64,), jnp.float32, 0.5, 1.5)
    ct = 0.1 * jax.random.normal(kc, (64,), jnp.float32)
    p3 = {"w": wt.astype(jnp.bfloat16), "scale": st, "shift": ct}

    got3 = conv3x3_s1(xt, p3, relu=True).astype(jnp.float32)
    ref3 = jax.lax.conv_general_dilated(
        deq(xt), deq(wt), (1, 1), ((1, 1), (1, 1)),
        dimension_numbers=("NHWC", "HWIO", "NHWC"), precision="highest")
    ref3 = jnp.maximum(ref3 * st[None, None, None] + ct[None, None, None], 0.0)
    assert jnp.allclose(got3, ref3, rtol=2e-2, atol=2e-2), \
        "conv3x3 stride-1 kernel mismatch"

    got4 = conv3x3_s2(xt, p3, relu=True).astype(jnp.float32)
    ref4 = jax.lax.conv_general_dilated(
        deq(xt), deq(wt), (2, 2), ((1, 1), (1, 1)),
        dimension_numbers=("NHWC", "HWIO", "NHWC"), precision="highest")
    ref4 = jnp.maximum(ref4 * st[None, None, None] + ct[None, None, None], 0.0)
    assert got4.shape == ref4.shape, "conv3x3 stride-2 shape mismatch"
    assert jnp.allclose(got4, ref4, rtol=2e-2, atol=2e-2), \
        "conv3x3 stride-2 kernel mismatch"

    # --- full forward ---
    params = init_image_encoder_params(0)
    fwd = jax.jit(functools.partial(image_encoder_forward,
                                    num_image_embeds=NUM_IMAGE_EMBEDS))
    feats = jax.block_until_ready(fwd(params, x))
    assert feats.shape == (2, NUM_IMAGE_EMBEDS, 2048)
    assert bool(jnp.all(jnp.isfinite(feats)))
    print("KERNEL_OK")
</pallas_src>

<mosaic_0001>
module attributes {stable_mosaic.version = 11 : i64} {
  func.func @_mm_bn_act_kernel(%arg0: i32, %arg1: i32, %arg2: i32, %arg3: memref<40x75xbf16, #tpu.memory_space<vmem>>, %arg4: memref<75x50xbf16, #tpu.memory_space<vmem>>, %arg5: memref<1x50xf32, #tpu.memory_space<vmem>>, %arg6: memref<1x50xf32, #tpu.memory_space<vmem>>, %arg7: memref<40x50xbf16, #tpu.memory_space<vmem>>, %arg8: memref<40x50xf32, #tpu.memory_space<vmem>>) attributes {dimension_semantics = [#tpu.dimension_semantics<parallel>, #tpu.dimension_semantics<parallel>, #tpu.dimension_semantics<arbitrary>], iteration_bounds = array<i64: 1, 1, 1>, scalar_prefetch = 0 : i64, scratch_operands = 1 : i64, tpu.core_type = #tpu.core_type<tc>, window_params = [{transform_indices = @transform_0, window_bounds = array<i64: 40, 75>}, {transform_indices = @transform_1, window_bounds = array<i64: 75, 50>}, {transform_indices = @transform_2, window_bounds = array<i64: 1, 50>}, {transform_indices = @transform_3, window_bounds = array<i64: 1, 50>}, {transform_indices = @transform_4, window_bounds = array<i64: 40, 50>}]} {
    %c0_i32 = arith.constant 0 : i32
    %0 = arith.cmpi eq, %arg2, %c0_i32 : i32
    %1 = arith.extui %0 : i1 to i32
    %c0_i32_0 = arith.constant 0 : i32
    %2 = arith.cmpi ne, %1, %c0_i32_0 : i32
    scf.if %2 {
      %cst_10 = arith.constant 0.000000e+00 : f32
      %12 = vector.broadcast %cst_10 : f32 to vector<40x50xf32>
      %c0_11 = arith.constant 0 : index
      %c0_12 = arith.constant 0 : index
      %13 = vector.load %arg8[%c0_11, %c0_12] : memref<40x50xf32, #tpu.memory_space<vmem>>, vector<40x50xf32>
      tpu.vector_store %arg8[%c0_11, %c0_12], %12 {strides = array<i32>} : memref<40x50xf32, #tpu.memory_space<vmem>>, vector<40x50xf32>,
    } else {
    }
    %c0 = arith.constant 0 : index
    %c0_1 = arith.constant 0 : index
    %3 = vector.load %arg8[%c0, %c0_1] : memref<40x50xf32, #tpu.memory_space<vmem>>, vector<40x50xf32>
    %c0_2 = arith.constant 0 : index
    %c0_3 = arith.constant 0 : index
    %4 = vector.load %arg3[%c0_2, %c0_3] : memref<40x75xbf16, #tpu.memory_space<vmem>>, vector<40x75xbf16>
    %c0_4 = arith.constant 0 : index
    %c0_5 = arith.constant 0 : index
    %5 = vector.load %arg4[%c0_4, %c0_5] : memref<75x50xbf16, #tpu.memory_space<vmem>>, vector<75x50xbf16>
    %cst = arith.constant dense<0.000000e+00> : vector<40x50xf32>
    %6 = tpu.matmul %4, %5, %cst {dimension_numbers = #tpu.dot_dimension_numbers<[1], [0], [0], [1], [0, 0, 1, 1], [], []>} : vector<40x75xbf16>, vector<75x50xbf16>, vector<40x50xf32> -> vector<40x50xf32>
    %7 = arith.addf %3, %6 : vector<40x50xf32>
    %c0_6 = arith.constant 0 : index
    %c0_7 = arith.constant 0 : index
    %8 = vector.load %arg8[%c0_6, %c0_7] : memref<40x50xf32, #tpu.memory_space<vmem>>, vector<40x50xf32>
    tpu.vector_store %arg8[%c0_6, %c0_7], %7 {strides = array<i32>} : memref<40x50xf32, #tpu.memory_space<vmem>>, vector<40x50xf32>,
    %c0_i32_8 = arith.constant 0 : i32
    %9 = arith.cmpi eq, %arg2, %c0_i32_8 : i32
    %10 = arith.extui %9 : i1 to i32
    %c0_i32_9 = arith.constant 0 : i32
    %11 = arith.cmpi ne, %10, %c0_i32_9 : i32
    scf.if %11 {
      %c0_10 = arith.constant 0 : index
      %c0_11 = arith.constant 0 : index
      %12 = vector.load %arg8[%c0_10, %c0_11] : memref<40x50xf32, #tpu.memory_space<vmem>>, vector<40x50xf32>
      %c0_12 = arith.constant 0 : index
      %c0_13 = arith.constant 0 : index
      %13 = vector.load %arg5[%c0_12, %c0_13] : memref<1x50xf32, #tpu.memory_space<vmem>>, vector<1x50xf32>
      %14 = vector.broadcast %13 : vector<1x50xf32> to vector<40x50xf32>
      %15 = arith.mulf %12, %14 : vector<40x50xf32>
      %c0_14 = arith.constant 0 : index
      %c0_15 = arith.constant 0 : index
      %16 = vector.load %arg6[%c0_14, %c0_15] : memref<1x50xf32, #tpu.memory_space<vmem>>, vector<1x50xf32>
      %17 = vector.broadcast %16 : vector<1x50xf32> to vector<40x50xf32>
      %18 = arith.addf %15, %17 : vector<40x50xf32>
      %cst_16 = arith.constant 0.000000e+00 : f32
      %19 = vector.broadcast %cst_16 : f32 to vector<40x50xf32>
      %20 = arith.maximumf %18, %19 : vector<40x50xf32>
      %21 = arith.truncf %20 : vector<40x50xf32> to vector<40x50xbf16>
      %c0_17 = arith.constant 0 : index
      %c0_18 = arith.constant 0 : index
      %22 = vector.load %arg7[%c0_17, %c0_18] : memref<40x50xbf16, #tpu.memory_space<vmem>>, vector<40x50xbf16>
      tpu.vector_store %arg7[%c0_17, %c0_18], %21 {strides = array<i32>} : memref<40x50xbf16, #tpu.memory_space<vmem>>, vector<40x50xbf16>,
    } else {
    }
    return
  }
  func.func @transform_0(%arg0: i32, %arg1: i32, %arg2: i32) -> (i32, i32) {
    %c0_i32 = arith.constant 0 : i32
    return %arg0, %arg2 : i32, i32
  }
  func.func @transform_1(%arg0: i32, %arg1: i32, %arg2: i32) -> (i32, i32) {
    %c0_i32 = arith.constant 0 : i32
    return %arg2, %arg1 : i32, i32
  }
  func.func @transform_2(%arg0: i32, %arg1: i32, %arg2: i32) -> (i32, i32) {
    %c0_i32 = arith.constant 0 : i32
    %c0_i32_0 = arith.constant 0 : i32
    return %c0_i32, %arg1 : i32, i32
  }
  func.func @transform_3(%arg0: i32, %arg1: i32, %arg2: i32) -> (i32, i32) {
    %c0_i32 = arith.constant 0 : i32
    %c0_i32_0 = arith.constant 0 : i32
    return %c0_i32, %arg1 : i32, i32
  }
  func.func @transform_4(%arg0: i32, %arg1: i32, %arg2: i32) -> (i32, i32) {
    %c0_i32 = arith.constant 0 : i32
    return %arg0, %arg1 : i32, i32
  }
}

</mosaic_0001>

<bundles_post_ra>
// kernel: tpu_custom_call.1
= control target key start
LH: loop header
LB: loop body
LE: loop exit
PB: predicated region body
PF: predicated region fallthrough
CT: control target
= control target key end

     0   :  { %vm101_vm0 = vcmask 1044480   ;;  %vm102_vm1 = vcmask 1045504   ;;  %vm23_vm2 = vcmask 408576   ;;  %v283_v3 = vmov 65535   ;;  %s364_s0 = inlined_call_operand.vmem [shape: bf16[40,75], index: 0, kind: input, shape index: {}]   ;;  %s365_s1 = inlined_call_operand.vmem [shape: bf16[75,50], index: 1, kind: input, shape index: {}]   ;;  %s366_s2 = inlined_call_operand.vmem [shape: f32[1,50], index: 2, kind: input, shape index: {}]   ;;  %s367_s3 = inlined_call_operand.vmem [shape: f32[1,50], index: 3, kind: input, shape index: {}]   ;;  %s368_s4 = inlined_call_operand.hbm [shape: bf16[40,50], index: 4, kind: output, shape index: {}]  }
   0x1   :  { %v228_v0 = vld [vmem:[%s365_s1 + $0x20] sm:$0xf]  ;;  %v239_v1 = vld [vmem:[%s365_s1 + $0x20] sm:$0x30]  ;;  %v103_v4 = vsel %vm101_vm0, 4294967295, %v283_v3  ;;  %v284_v6 = vmov 0.0  }
   0x2   :  { %v229_v2 = vor.u32 %v239_v1, %v228_v0  ;;  %v104_v5 = vsel %vm102_vm1, %v103_v4, 0  ;;  %24 = vst.msk [vmem:[#allocation2] sm:$0xff] %vm23_vm2, %v284_v6 }
   0x3   :  { %9 = vsyncpa [#allocation4], 0  ;;  %25 = vst.msk [vmem:[#allocation2 + $0x8] sm:$0xff] %vm23_vm2, %v284_v6  ;;  %v238_v8 = vld [vmem:[%s365_s1 + $0x18] sm:$0xff]  ;;  %v237_v9 = vld [vmem:[%s365_s1 + $0x10] sm:$0xff]  ;;  %vm91_vm3 = vcmask 613376  }
   0x4   :  { %v106_v7 = vand.u32 %v229_v2, %v104_v5  ;;  %26 = vst.msk [vmem:[#allocation2 + $0x10] sm:$0xff] %vm23_vm2, %v284_v6  ;;  %v236_v10 = vld [vmem:[%s365_s1 + $0x8] sm:$0xff]  ;;  %v38_v11 = vld [vmem:[%s364_s0 + $0x10] sm:$0xf]  ;;  %v235_v12 = vld [vmem:[%s365_s1] sm:$0xff]  ;;  %vm178_vm4 = vcmask 404480  }
   0x5   :  { %27 = vst.msk [vmem:[#allocation2 + $0x18] sm:$0xff] %vm23_vm2, %v284_v6  ;;  %v58_v13 = vunpack.c.l.b16 %v38_v11  ;;  %v233_v14 = vld [vmem:[%s364_s0] sm:$0xff]  ;;  %v234_v15 = vld [vmem:[%s364_s0 + $0x8] sm:$0xff]  ;;  %s190_s11 = sshll.u32 %s368_s4, 4  ;;  %s286_s12 = smov 64   ;;  %s191_s11 = int_to_ptr.hbm [resolvable:$true] %s190_s11 }
   0x6   :  { %111 = vmatpush.bf16.msra.mxu0 %v106_v7  ;;  %240 = vmatpush.bf16.msra.mxu1 %v106_v7  ;;  %28 = vst.msk [vmem:[#allocation2 + $0x20] sm:$0xff] %vm23_vm2, %v284_v6  ;;  %v255_v27 = vld [vmem:[%s366_s2] ss:$0 sm:$0xff]  ;;  %s285_s2 = smov [#allocation3]   ;;  %s287_s13 = smov 4  }
   0x7   :  { %241 = vmatpush.bf16.msra.mxu2 %v106_v7  ;;  %v61_v16 = vpack.c.b16 %v58_v13, %v58_v13  ;;  %v256_v33 = vld [vmem:[%s367_s3] ss:$0 sm:$0xff]  ;;  %s188_s3 = sshll.u32 %s285_s2, 4  ;;  %s189_s3 = int_to_ptr.vmem [resolvable:$true] %s188_s3 }
   0x9   :  { %v29_v17 = vld [vmem:[#allocation2] sm:$0xff] }
   0xa   :  { %112 = vmatpush.bf16.msra.mxu0 %v238_v8  ;;  %242 = vmatpush.bf16.msra.mxu1 %v238_v8  ;;  %v30_v24 = vld [vmem:[#allocation2 + $0x8] sm:$0xff] }
   0xb   :  { %243 = vmatpush.bf16.msra.mxu2 %v238_v8  ;;  %v31_v18 = vld [vmem:[#allocation2 + $0x10] sm:$0xff] }
   0xc   :  { %v32_v25 = vld [vmem:[#allocation2 + $0x18] sm:$0xff] }
   0xd   :  { %v33_v23 = vld [vmem:[#allocation2 + $0x20] sm:$0xff] }
   0xe   :  { %113 = vmatpush.bf16.msra.mxu0 %v237_v9  ;;  %244 = vmatpush.bf16.msra.mxu1 %v237_v9 }
   0xf   :  { %245 = vmatpush.bf16.msra.mxu2 %v237_v9 }
  0x12   :  { %114 = vmatpush.bf16.msra.mxu0 %v236_v10  ;;  %246 = vmatpush.bf16.msra.mxu1 %v236_v10 }
  0x13   :  { %247 = vmatpush.bf16.msra.mxu2 %v236_v10 }
  0x16   :  { %115 = vmatpush.bf16.msra.mxu0 %v235_v12  ;;  %248 = vmatpush.bf16.msra.mxu1 %v235_v12 }
  0x17   :  { %249 = vmatpush.bf16.msra.mxu2 %v235_v12 }
  0x19   :  { %230 = vmatmul.msk.bf16.vlgmr.msra.gmra.mxu0 %vm91_vm3, %v233_v14  ;;  %231 = vmatmul.msk.bf16.vlgmr.msra.gmra.mxu1 %vm91_vm3, %v234_v15 }
  0x1a   :  { %232 = vmatmul.msk.bf16.vlgmr.msra.gmra.mxu2 %vm91_vm3, %v61_v16 }
  0x96   :  { %v117_v19 = vpop.f32.mrf.mxu0  ;;  %v122_v20 = vpop.f32.mrf.mxu1 }
  0x97   :  { %v131_v21 = vadd.f32 %v117_v19, %v29_v17  ;;  %v133_v22 = vadd.f32 %v122_v20, %v31_v18 }
  0x99   :  { %137 = vst.msk [vmem:[#allocation2] sm:$0xff] %vm23_vm2, %v131_v21 }
  0x9a   :  { %139 = vst.msk [vmem:[#allocation2 + $0x10] sm:$0xff] %vm23_vm2, %v133_v22 }
  0x9d   :  { %v127_v26 = vpop.f32.mrf.mxu2 }
  0x9e   :  { %v135_v28 = vadd.f32 %v127_v26, %v33_v23  ;;  %v119_v29 = vpop.f32.mrf.mxu0  ;;  %v124_v30 = vpop.f32.mrf.mxu1 }
  0x9f   :  { %v132_v31 = vadd.f32 %v119_v29, %v30_v24  ;;  %v134_v32 = vadd.f32 %v124_v30, %v32_v25 }
  0xa0   :  { %141 = vst.msk [vmem:[#allocation2 + $0x20] sm:$0xff] %vm23_vm2, %v135_v28  ;;  %v145_v34 = vld [vmem:[#allocation2] sm:$0xff] }
  0xa1   :  { %138 = vst.msk [vmem:[#allocation2 + $0x8] sm:$0xff] %vm23_vm2, %v132_v31  ;;  %v147_v35 = vld [vmem:[#allocation2 + $0x10] sm:$0xff]  ;;  %v154_v36 = vmul.f32 %v255_v27, %v145_v34 }
  0xa2   :  { %140 = vst.msk [vmem:[#allocation2 + $0x18] sm:$0xff] %vm23_vm2, %v134_v32  ;;  %v156_v37 = vmul.f32 %v255_v27, %v147_v35 }
  0xa3   :  { %v163_v38 = vadd.f32 %v256_v33, %v154_v36 }
  0xa4   :  { %v165_v39 = vadd.f32 %v256_v33, %v156_v37 }
  0xa5   :  { %v129_v40 = vpop.f32.mrf.mxu2  ;;  %v168_v41 = vmax.f32 %v163_v38, 0.0 }
  0xa6   :  { %v170_v42 = vmax.f32 %v165_v39, 0.0 }
  0xa7   :  { %v149_v43 = vld [vmem:[#allocation2 + $0x20] sm:$0xff]  ;;  %v173_v44 = vpack.c.bf16 %v168_v41, %v168_v41 }
  0xa8   :  { %v146_v45 = vld [vmem:[#allocation2 + $0x8] sm:$0xff]  ;;  %v158_v46 = vmul.f32 %v255_v27, %v149_v43  ;;  %v175_v47 = vpack.c.bf16 %v170_v42, %v170_v42 }
  0xa9   :  { %v148_v48 = vld [vmem:[#allocation2 + $0x18] sm:$0xff]  ;;  %v155_v49 = vmul.f32 %v255_v27, %v146_v45  ;;  %179 = vst.msk [vmem:[#allocation3] sm:$0xf] %vm178_vm4, %v173_v44 }
  0xaa   :  { %v157_v50 = vmul.f32 %v255_v27, %v148_v48  ;;  %v167_v51 = vadd.f32 %v256_v33, %v158_v46  ;;  %181 = vst.msk [vmem:[#allocation3 + $0x8] sm:$0xf] %vm178_vm4, %v175_v47 }
  0xab   :  { %v164_v52 = vadd.f32 %v256_v33, %v155_v49 }
  0xac   :  { %v166_v53 = vadd.f32 %v256_v33, %v157_v50  ;;  %v172_v54 = vmax.f32 %v167_v51, 0.0 }
  0xad   :  { %v169_v55 = vmax.f32 %v164_v52, 0.0 }
  0xae   :  { %v171_v56 = vmax.f32 %v166_v53, 0.0  ;;  %v177_v57 = vpack.c.bf16 %v172_v54, %v172_v54 }
  0xaf   :  { %v174_v58 = vpack.c.bf16 %v169_v55, %v169_v55 }
  0xb0   :  { %v176_v59 = vpack.c.bf16 %v171_v56, %v171_v56  ;;  %183 = vst.msk [vmem:[#allocation3 + $0x10] sm:$0xf] %vm178_vm4, %v177_v57 }
  0xb1   :  { %180 = vst.msk [vmem:[#allocation3 + $0x4] sm:$0xf] %vm178_vm4, %v174_v58 }
  0xb2   :  { %182 = vst.msk [vmem:[#allocation3 + $0xc] sm:$0xf] %vm178_vm4, %v176_v59 }
  0xb3   :  { %196 = dma.vmem_to_hbm [thread:$0]  %s189_s3, 320, %s191_s11, [#allocation4], %s286_s12, %s286_s12, %s287_s13  }
  0xb4   :  { %281 = dma.done.wait [#allocation4], 320  }
  0xb5   :  { %282 = vsyncadd [#allocation4], 4294966976 }
  0xb6   :  { %201 = vsyncpa [#allocation4], 1 }

</bundles_post_ra>
